<compile_context>
chip_gen: v7x
topology: tpu7x:2x2x1
jax: 0.10.0
libtpu: 0.0.40
codegen_flags: <defaults>
</compile_context>

<pallas_src>
import functools

import jax
import jax.numpy as jnp
from jax import lax
from jax.experimental import pallas as pl
from jax.experimental.pallas import tpu as pltpu


def _round_up(x, m):
    return ((x + m - 1) // m) * m


def _stream_kernel(x_ref, scale_ref, psum_ref, *, hw_total, hw_tile, mask_needed):
    """Per-tile: scale = sigmoid(x); accumulate per-row pool partial sums."""
    j = pl.program_id(1)                     # HW (reduction) step — last grid axis

    x = x_ref[...]                           # (row_tile, hw_tile)
    # sigmoid(x) == 0.5*tanh(0.5*x)+0.5 : a single EUP transcendental per
    # element (no full-precision divide), keeps the stream HBM-bound on v7x.
    scale_ref[...] = (0.5 * jnp.tanh(0.5 * x) + 0.5).astype(scale_ref.dtype)

    # Fused global-average-pool: masked row partial sums (divide by HW later).
    if mask_needed:                          # static: only when HW % hw_tile != 0
        col = j * hw_tile + lax.broadcasted_iota(jnp.int32, x.shape, 1)
        x = jnp.where(col < hw_total, x, 0.0)
    partial = jnp.sum(x, axis=-1, keepdims=True)        # (row_tile, 1), XLU reduce

    @pl.when(j == 0)
    def _():
        psum_ref[...] = jnp.zeros_like(psum_ref)

    psum_ref[...] += partial


def _mlp_kernel(psum_ref, w1_ref, b1_ref, w2_ref, b2_ref, att_ref, *, inv_hw):
    """Tiny Linear(C, C//4) -> ReLU -> Linear(C//4, C); /HW finalize folded in."""
    pool = psum_ref[...] * inv_hw            # finalize avg-pool here (no XLA epilogue)
    h = jnp.dot(pool, w1_ref[...], preferred_element_type=jnp.float32) + b1_ref[...]
    h = jnp.maximum(h, 0.0)
    att_ref[...] = (jnp.dot(h, w2_ref[...], preferred_element_type=jnp.float32)
                    + b2_ref[...]).astype(att_ref.dtype)


def channel_gate(x, w1, b1, w2, b2, *, row_tile=512, hw_tile=2048):
    """ChannelGate forward.

    x: (B, C, H, W).  w1: (C, C//4), b1: (1, C//4), w2: (C//4, C), b2: (1, C).
    Returns (scale, channel_att_sum); the PyTorch module returns only `scale`.
    """
    B, C, H, W = x.shape
    N, HW = B * C, H * W
    itemsize = int(jnp.dtype(x.dtype).itemsize)

    # ---- Generation-aware VMEM budget (v7x halves VMEM to 64 MiB/TC). ----
    try:
        vmem_cap = int(pltpu.get_tpu_info().vmem_capacity_bytes)
    except Exception:  # pragma: no cover - conservative fallback
        vmem_cap = 64 << 20
    budget = min(vmem_cap // 2, 48 << 20)    # cap on the pipelined footprint

    # ---- Row (parallel) tile: multiple of 8; guarantee >= 2 blocks when
    #      possible so the grid shards across both v7x TensorCores. ----
    row_tile = max(8, _round_up(row_tile, 8))
    rt = min(row_tile, _round_up(N, 8))
    if N > 8 and pl.cdiv(N, rt) < 2:
        rt = _round_up(pl.cdiv(N, 2), 8)

    # ---- HW (streaming) tile: lane-dense; pick a divisor of HW when HW is a
    #      multiple of 128 so no mask / padded tail is needed. ----
    hw_tile = max(128, _round_up(hw_tile, 128))
    if HW <= hw_tile:
        ht = HW                              # full extent
        mask_needed = False
    elif HW % 128 == 0:
        ht = 128
        for cand in range(hw_tile, 127, -128):
            if HW % cand == 0:
                ht = cand
                break
        mask_needed = False
    else:
        ht = hw_tile
        mask_needed = True

    # ---- Keep the double-buffered in+out footprint inside the budget. ----
    while 4 * rt * ht * itemsize > budget and rt > 8:
        rt = max(8, _round_up(rt // 2, 8))
    block_bytes = rt * ht * itemsize
    vmem_limit = max(4 * block_bytes + (4 << 20), 16 << 20)
    vmem_limit = int(min(vmem_limit, budget + (8 << 20), vmem_cap))

    grid = (pl.cdiv(N, rt), pl.cdiv(HW, ht))
    xf = x.reshape(N, HW)

    kern = functools.partial(_stream_kernel, hw_total=HW, hw_tile=ht,
                             mask_needed=mask_needed)

    scale_f, psum = pl.pallas_call(
        kern,
        out_shape=(jax.ShapeDtypeStruct((N, HW), x.dtype),
                   jax.ShapeDtypeStruct((N, 1), jnp.float32)),
        grid=grid,
        in_specs=[pl.BlockSpec((rt, ht), lambda i, j: (i, j))],
        out_specs=(
            pl.BlockSpec((rt, ht), lambda i, j: (i, j)),   # sigmoid(x), lane-dense
            pl.BlockSpec((rt, 1), lambda i, j: (i, 0)),    # pool sum accumulator
        ),
        compiler_params=pltpu.CompilerParams(
            dimension_semantics=("parallel", "arbitrary"),
            vmem_limit_bytes=vmem_limit),
    )(xf)

    # Raw per-channel sums; the /HW finalize happens inside the MLP kernel.
    pool_sum = psum.reshape(B, C)

    att = pl.pallas_call(
        functools.partial(_mlp_kernel, inv_hw=1.0 / float(HW)),
        out_shape=jax.ShapeDtypeStruct((B, C), x.dtype),
    )(pool_sum, w1, b1, w2, b2)

    return scale_f.reshape(B, C, H, W), att


if __name__ == "__main__":
    # Small shapes consistent with the module (NCHW, hidden = C // 4).
    B, C, H, W = 2, 16, 32, 32
    hid = C // 4

    key = jax.random.PRNGKey(0)
    kx, kw1, kb1, kw2, kb2, kx2 = jax.random.split(key, 6)

    x = jax.random.normal(kx, (B, C, H, W), dtype=jnp.float32)
    # torch.nn.Linear weights, stored pre-transposed as (in, out).
    w1 = jax.random.normal(kw1, (C, hid), dtype=jnp.float32) * 0.1
    b1 = jax.random.normal(kb1, (1, hid), dtype=jnp.float32) * 0.1
    w2 = jax.random.normal(kw2, (hid, C), dtype=jnp.float32) * 0.1
    b2 = jax.random.normal(kb2, (1, C), dtype=jnp.float32) * 0.1

    def ref(xx):
        ref_scale = jax.nn.sigmoid(xx)
        ref_pool = jnp.mean(xx.reshape(xx.shape[0], xx.shape[1], -1), axis=-1)
        ref_att = jnp.maximum(ref_pool @ w1 + b1, 0.0) @ w2 + b2
        return ref_scale, ref_att

    # Run 1: small hw_tile so the test exercises a real (parallel, arbitrary)
    # 2x2 grid with the divisor-of-HW (unmasked) path.
    scale, att = channel_gate(x, w1, b1, w2, b2, row_tile=16, hw_tile=512)
    scale = jax.block_until_ready(scale)
    att = jax.block_until_ready(att)
    r_scale, r_att = ref(x)
    assert scale.shape == (B, C, H, W)
    assert att.shape == (B, C)
    assert jnp.allclose(scale, r_scale, atol=1e-5, rtol=1e-5)
    assert jnp.allclose(att, r_att, atol=1e-4, rtol=1e-4)

    # Run 2: non-multiple-of-128 spatial size exercises the masked-tail path
    # (and default large-tile selection).
    H2, W2 = 30, 30
    x2 = jax.random.normal(kx2, (B, C, H2, W2), dtype=jnp.float32)
    scale2, att2 = channel_gate(x2, w1, b1, w2, b2, hw_tile=512)
    scale2 = jax.block_until_ready(scale2)
    att2 = jax.block_until_ready(att2)
    r_scale2, r_att2 = ref(x2)
    assert jnp.allclose(scale2, r_scale2, atol=1e-5, rtol=1e-5)
    assert jnp.allclose(att2, r_att2, atol=1e-4, rtol=1e-4)

    print("KERNEL_OK")
</pallas_src>

<mosaic_0001>
module attributes {stable_mosaic.version = 11 : i64} {
  func.func @_stream_kernel(%arg0: i32, %arg1: i32, %arg2: memref<16x512xf32, #tpu.memory_space<vmem>>, %arg3: memref<16x512xf32, #tpu.memory_space<vmem>>, %arg4: memref<16x1xf32, #tpu.memory_space<vmem>>) attributes {dimension_semantics = [#tpu.dimension_semantics<parallel>, #tpu.dimension_semantics<arbitrary>], iteration_bounds = array<i64: 2, 2>, scalar_prefetch = 0 : i64, scratch_operands = 0 : i64, tpu.core_type = #tpu.core_type<tc>, window_params = [{transform_indices = @transform_0, window_bounds = array<i64: 16, 512>}, {transform_indices = @transform_1, window_bounds = array<i64: 16, 512>}, {transform_indices = @transform_2, window_bounds = array<i64: 16, 1>}]} {
    %c0 = arith.constant 0 : index
    %c0_0 = arith.constant 0 : index
    %0 = vector.load %arg2[%c0, %c0_0] : memref<16x512xf32, #tpu.memory_space<vmem>>, vector<16x512xf32>
    %cst = arith.constant 5.000000e-01 : f32
    %1 = vector.broadcast %cst : f32 to vector<16x512xf32>
    %2 = arith.mulf %1, %0 : vector<16x512xf32>
    %3 = math.tanh %2 : vector<16x512xf32>
    %cst_1 = arith.constant 5.000000e-01 : f32
    %4 = vector.broadcast %cst_1 : f32 to vector<16x512xf32>
    %5 = arith.mulf %4, %3 : vector<16x512xf32>
    %cst_2 = arith.constant 5.000000e-01 : f32
    %6 = vector.broadcast %cst_2 : f32 to vector<16x512xf32>
    %7 = arith.addf %5, %6 : vector<16x512xf32>
    %c0_3 = arith.constant 0 : index
    %c0_4 = arith.constant 0 : index
    %8 = vector.load %arg3[%c0_3, %c0_4] : memref<16x512xf32, #tpu.memory_space<vmem>>, vector<16x512xf32>
    tpu.vector_store %arg3[%c0_3, %c0_4], %7 {strides = array<i32>} : memref<16x512xf32, #tpu.memory_space<vmem>>, vector<16x512xf32>,
    %cst_5 = arith.constant dense<0.000000e+00> : vector<16xf32>
    %9 = vector.multi_reduction <add>, %0, %cst_5 [1] : vector<16x512xf32> to vector<16xf32>
    %10 = vector.shape_cast %9 : vector<16xf32> to vector<16x1xf32>
    %c0_i32 = arith.constant 0 : i32
    %11 = arith.cmpi eq, %arg1, %c0_i32 : i32
    %12 = arith.extui %11 : i1 to i32
    %c0_i32_6 = arith.constant 0 : i32
    %13 = arith.cmpi ne, %12, %c0_i32_6 : i32
    scf.if %13 {
      %cst_11 = arith.constant 0.000000e+00 : f32
      %17 = vector.broadcast %cst_11 : f32 to vector<16x1xf32>
      %c0_12 = arith.constant 0 : index
      %c0_13 = arith.constant 0 : index
      %18 = vector.load %arg4[%c0_12, %c0_13] : memref<16x1xf32, #tpu.memory_space<vmem>>, vector<16x1xf32>
      tpu.vector_store %arg4[%c0_12, %c0_13], %17 {strides = array<i32>} : memref<16x1xf32, #tpu.memory_space<vmem>>, vector<16x1xf32>,
    } else {
    }
    %c0_7 = arith.constant 0 : index
    %c0_8 = arith.constant 0 : index
    %14 = vector.load %arg4[%c0_7, %c0_8] : memref<16x1xf32, #tpu.memory_space<vmem>>, vector<16x1xf32>
    %15 = arith.addf %14, %10 : vector<16x1xf32>
    %c0_9 = arith.constant 0 : index
    %c0_10 = arith.constant 0 : index
    %16 = vector.load %arg4[%c0_9, %c0_10] : memref<16x1xf32, #tpu.memory_space<vmem>>, vector<16x1xf32>
    tpu.vector_store %arg4[%c0_9, %c0_10], %15 {strides = array<i32>} : memref<16x1xf32, #tpu.memory_space<vmem>>, vector<16x1xf32>,
    return
  }
  func.func @transform_0(%arg0: i32, %arg1: i32) -> (i32, i32) {
    %c0_i32 = arith.constant 0 : i32
    return %arg0, %arg1 : i32, i32
  }
  func.func @transform_1(%arg0: i32, %arg1: i32) -> (i32, i32) {
    %c0_i32 = arith.constant 0 : i32
    return %arg0, %arg1 : i32, i32
  }
  func.func @transform_2(%arg0: i32, %arg1: i32) -> (i32, i32) {
    %c0_i32 = arith.constant 0 : i32
    %c0_i32_0 = arith.constant 0 : i32
    return %arg0, %c0_i32 : i32, i32
  }
}

</mosaic_0001>

<bundles_post_ra>
// kernel: tpu_custom_call.1
= control target key start
LH: loop header
LB: loop body
LE: loop exit
PB: predicated region body
PF: predicated region fallthrough
CT: control target
= control target key end

     0   :  { %8 = vsyncpa [#allocation3], 0  ;;  %s908_s0 = inlined_call_operand.hbm [shape: f32[32,1024], index: 0, kind: input, shape index: {}]   ;;  %s909_s1 = inlined_call_operand.hbm [shape: f32[32,1024], index: 1, kind: output, shape index: {0}]   ;;  %s910_s2 = inlined_call_operand.vmem [shape: f32[32,1], index: 2, kind: output, shape index: {1}]  }
   0x1   :  { %10 = vsyncpa [#allocation3 + $0x1], 0 }
   0x2   :  { %11 = vsyncpa [#allocation4], 0 }
   0x3   :  { %13 = vsyncpa [#allocation4 + $0x1], 0  ;;  %s691_s9 = smov 0   ;;  %s693_s10 = smov 0  }
   0x4   :  { %s695_s11 = smov 0   ;;  %s697_s12 = smov 0  }
   0x5   :  { %s699_s13 = smov 0   ;;  %s701_s14 = smov 0  }
   0x6   :  { %s703_s15 = smov 0   ;;  %s705_s16 = smov 0  }
   0x7 LB: > { %s412_s17 = sadd.s32 4294967295, %s665_s16   ;;  %s413_s18 = sadd.s32 4294967294, %s665_s16   ;;  %s665_s16 = sphi %s705_s16, %s19_s16   ;;  %s661_s15 = sphi %s703_s15, %s926_s15   ;;  %s657_s14 = sphi %s701_s14, %s925_s14   ;;  %s653_s13 = sphi %s699_s13, %s924_s13   ;;  %s649_s12 = sphi %s697_s12, %s923_s12   ;;  %s645_s11 = sphi %s695_s11, %s922_s11   ;;  %s641_s10 = sphi %s693_s10, %s921_s10   ;;  %s637_s9 = sphi %s691_s9, %s920_s9  }
   0x8   : > { %s28_s19 = sadd.s32 1, %s657_s14  ;;  %s31_s20 = sadd.s32 1, %s661_s15 }
   0x9   : > { %p29_p0 = scmp.ge.s32.totalorder %s28_s19, 2  ;;  %s40_s21 = sadd.s32 1, %s645_s11 }
   0xa   : > { %p47_p1 = scmp.ne.s32.totalorder %s645_s11, %s641_s10  ;;  %p48_p2 = scmp.eq.s32.totalorder %s665_s16, 0 }
   0xb   : > { %s928_s19 = smov (%p29_p0, %s28_s19), 0  ;;  %s930_s20 = smov (!%p29_p0, %s31_s20), %s661_s15 }
   0xc   : > { %s36_s22 = ssub.s32 %s657_s14, %s928_s19  ;;  %p744_p3 = por %p48_p2, %p47_p1 }
   0xd   : > { %p33_p4 = scmp.ge.s32.totalorder %s930_s20, 2  ;;  %p53_p5 = scmp.ne.s32.totalorder %s641_s10, %s637_s9 }
   0xe   : > { %p54_p6 = scmp.eq.s32.totalorder %s412_s17, 0  ;;  %p79_p7 = scmp.eq.s32.totalorder %s412_s17, 3 }
   0xf   : > { %s932_s20 = smov (%p33_p4, %s930_s20), 0  ;;  %p85_p10 = scmp.eq.s32.totalorder %s413_s18, 3 }
  0x10   : > { %p752_p8 = por %p54_p6, %p53_p5  ;;  %p756_p9 = por %p79_p7, %p47_p1 }
  0x11   : > { %s35_s26 = ssub.s32 %s661_s15, %s932_s20  ;;  %p762_p12 = por %p85_p10, %p53_p5 }
  0x12   : > { %s914_s25 = scalar_select %p756_p9, 1, 0 }
  0x13   : > { %s37_s27 = sor.u32 %s36_s22, %s35_s26  ;;  %p448_p13 = scmp.lt.s32.totalorder %s665_s16, 4 }
  0x14   : > { %p38_p11 = scmp.eq.s32.totalorder %s37_s27, 0  ;;  %s131_s29 = sand.u32 1, %s645_s11  }
  0x15   : > { %s915_s28 = scalar_select %p762_p12, 1, 0 }
  0x16   : > { %s769_s30 = scalar_select %p38_p11, %s645_s11, %s40_s21  }
  0x17   : > { %s416_s3 = sshll.u32 %s131_s29, 6  ;;  %s418_s4 = sshll.u32 %s657_s14, 2 }
  0x18   : > { %s434_s5 = sshll.u32 %s661_s15, 4  ;;  %s135_s6 = scalar_lea.vmem [#allocation2], %s416_s3 }
  0x19   : > { %s145_s7 = sshll.u32 %s135_s6, 4  ;;  %s142_s8 = sadd.s32 %s434_s5, %s418_s4  ;;  %s773_s7 = int_to_ptr.vmem [resolvable:$true] %s145_s7 }
  0x1a   : > { %s420_s17 = sshll.u32 %s142_s8, 7  ;;  %p777_p0 = pnand %p448_p13, %p744_p3 }
  0x1b   : > { %s784_s21 = scalar_lea.hbm %s908_s0, %s420_s17  ;;  %s787_s27 = scalar_lea.sflag [#allocation3], %s131_s29 }
  0x1c   : > { %s537_s3 = scalar_lea.hbm %s784_s21, 1024  ;;  %p539_p3 = pneg %p777_p0 }
  0x1d   : > { %p538_p2 = scmp.ne.s32.totalorder %s784_s21, %s537_s3  ;;  %s542_s5 = scalar_lea.hbm %s908_s0, 4096 }
  0x1e   : > { %p543_p6 = scmp.lt.u32.totalorder %s784_s21, %s908_s0  ;;  %p544_p7 = scmp.lt.u32.totalorder %s542_s5, %s537_s3 }
  0x1f   : > { %p540_p4 = pnand %p539_p3, %p538_p2  ;;  %p546_p11 = scmp.lt.u32.totalorder %s537_s3, %s784_s21 }
  0x20   : > { %p545_p10 = por %p544_p7, %p543_p6 }
  0x21   : > { %p541_p5 = pneg %p540_p4 }
  0x22   : > { %p547_p13 = por %p546_p11, %p545_p10 }
  0x24   : > { %p548_p1 = pnand %p547_p13, %p541_p5 }
  0x26   : > { %551 = shalt.err (!%p548_p1)
}
  0x27   : > { %s552_s29 = scalar_lea.vmem %s773_s7, 1024  ;;  %s667_s17 = smov [#allocation2]  }
  0x28   : > { %p553_p2 = scmp.ne.s32.totalorder %s773_s7, %s552_s29  ;;  %s557_s22 = sshll.u32 %s667_s17, 4  ;;  %s558_s22 = int_to_ptr.vmem [resolvable:$false] %s557_s22 }
  0x29   : > { %s559_s26 = scalar_lea.vmem %s558_s22, 2048  ;;  %p560_p9 = scmp.lt.s32.totalorder %s773_s7, %s558_s22 }
  0x2a   : > { %p555_p4 = pnand %p553_p2, %p539_p3  ;;  %p561_p6 = scmp.lt.s32.totalorder %s559_s26, %s552_s29 }
  0x2c   : > { %p556_p12 = pneg %p555_p4  ;;  %p562_p7 = por %p561_p6, %p560_p9 }
  0x2e   : > { %p563_p10 = pnand %p562_p7, %p556_p12 }
  0x30   : > { %566 = shalt.err (!%p563_p10)
}
  0x31   : > { %s668_s3 = smov 1024   ;;  %s669_s23 = smov 512  }
  0x32   : > { %s670_s4 = smov 32   ;;  %p153_p1 = scmp.lt.s32.totalorder %s665_s16, 5 }
  0x33   : > { %443 = dma.hbm_to_vmem [thread:$0]  (!%p777_p0), %s784_s21, 1024, %s773_s7, %s787_s27, %s668_s3, %s669_s23, %s670_s4  }
  0x34   : > { %p917_p3 = scmp.ge.s32.totalorder %s665_s16, 1 }
  0x36   : > { %p154_p5 = pnand %p917_p3, %p153_p1 }
  0x37   : > { %s819_s5 = sand.u32 (!%p154_p5), 1, %s641_s10  }
  0x38   : > { %157 = sbr.rel (%p154_p5) target bundleno = 246 (0xf6), region = 24  ;;  %s422_s6 = sshll.u32 (!%p154_p5), %s819_s5, 6 }
  0x39   : > { %s160_s8 = scalar_lea.sflag (!%p154_p5), [#allocation3], %s819_s5  ;;  %s163_s29 = scalar_lea.vmem (!%p154_p5), [#allocation2], %s422_s6 }
  0x3f   : > { %628 = dma.done.wait (%p752_p8), %s160_s8, 1024  }
  0x40   : > { %630 = vsyncadd (%p752_p8), %s160_s8, 4294966272  ;;  %v199_v0 = vld [vmem:[%s163_s29] sm:$0xff]  ;;  %v200_v1 = vld [vmem:[%s163_s29 + $0x8] sm:$0xff]  ;;  %s831_s24 = scalar_lea.vmem [#allocation5], %s422_s6  ;;  %s424_s7 = sshll.u32 %s653_s13, 1 }
  0x41   : > { %v201_v2 = vld [vmem:[%s163_s29 + $0x10] sm:$0xff]  ;;  %v202_v3 = vld [vmem:[%s163_s29 + $0x18] sm:$0xff]  ;;  %v208_v4 = vmul.f32 0.5, %v200_v1  ;;  %v247_v6 = vadd.f32 %v200_v1, %v199_v0  ;;  %v203_v7 = vld [vmem:[%s163_s29 + $0x20] sm:$0xff]  ;;  %v207_v10 = vmul.f32 0.5, %v199_v0  ;;  %p194_p8 = scmp.lt.s32.totalorder %s424_s7, 3 }
  0x42   : > { %v209_v5 = vmul.f32 0.5, %v201_v2  ;;  %v204_v8 = vld [vmem:[%s163_s29 + $0x28] sm:$0xff]  ;;  %v210_v9 = vmul.f32 0.5, %v202_v3  ;;  %v205_v11 = vld [vmem:[%s163_s29 + $0x30] sm:$0xff]  ;;  %v211_v14 = vmul.f32 0.5, %v203_v7  ;;  %v206_v15 = vld [vmem:[%s163_s29 + $0x38] sm:$0xff] }
  0x43   : > { %v252_v12 = vadd.f32 %v204_v8, %v203_v7  ;;  %521 = vtanh.f32 %v208_v4  ;;  %v248_v13 = vadd.f32 %v247_v6, %v201_v2  ;;  %v212_v16 = vmul.f32 0.5, %v204_v8  ;;  %s934_s7 = smov (!%p194_p8, %s424_s7), 3  ;;  %p426_p9 = scmp.ne.s32.totalorder %s649_s12, 0 }
  0x44   : > { %523 = vtanh.f32 %v209_v5  ;;  %v213_v19 = vmul.f32 0.5, %v205_v11  ;;  %v214_v20 = vmul.f32 0.5, %v206_v15  ;;  %s425_s18 = sshll.u32 %s934_s7, 3  ;;  %vm261_vm0 = vcmask (!%p426_p9), 7168  }
  0x45   : > { %v253_v17 = vadd.f32 %v252_v12, %v205_v11  ;;  %525 = vtanh.f32 %v210_v9  ;;  %v249_v18 = vadd.f32 %v248_v13, %v202_v3  ;;  %s197_s17 = scalar_lea.vmem %s910_s2, %s425_s18  ;;  %v671_v48 = vmov (!%p426_p9), 0.0  }
  0x46   : > { %527 = vtanh.f32 %v207_v10  ;;  %262 = vst.msk [vmem:[%s197_s17] sm:$0xff] (!%p426_p9), %vm261_vm0, %v671_v48  ;;  %263 = vst.msk [vmem:[%s197_s17 + $0x8] sm:$0xff] (!%p426_p9), %vm261_vm0, %v671_v48 }
  0x47   : > { %250 = vadd.xlane.f32.xlu0 %v249_v18  ;;  %529 = vtanh.f32 %v211_v14  ;;  %v254_v21 = vadd.f32 %v253_v17, %v206_v15 }
  0x48   : > { %531 = vtanh.f32 %v212_v16 }
  0x49   : > { %533 = vtanh.f32 %v213_v19 }
  0x4a   : > { %535 = vtanh.f32 %v214_v20 }
  0x4b   : > { %255 = vadd.xlane.f32.xlu0 %v254_v21 }
  0x4d   : > { %v522_v22 = vpop.eup %521 }
  0x4e   : > { %v524_v23 = vpop.eup %523  ;;  %v224_v24 = vmul.f32 0.5, %v522_v22 }
  0x4f   : > { %v526_v25 = vpop.eup %525  ;;  %v225_v26 = vmul.f32 0.5, %v524_v23 }
  0x50   : > { %v528_v27 = vpop.eup %527  ;;  %v226_v28 = vmul.f32 0.5, %v526_v25  ;;  %v232_v29 = vadd.f32 0.5, %v224_v24 }
  0x51   : > { %v530_v30 = vpop.eup %529  ;;  %v233_v31 = vadd.f32 0.5, %v225_v26  ;;  %v223_v32 = vmul.f32 0.5, %v528_v27 }
  0x52   : > { %v532_v33 = vpop.eup %531  ;;  %v234_v34 = vadd.f32 0.5, %v226_v28  ;;  %240 = vst [vmem:[%s831_s24 + $0x8] sm:$0xff] %v232_v29  ;;  %v227_v35 = vmul.f32 0.5, %v530_v30 }
  0x53   : > { %v534_v36 = vpop.eup %533  ;;  %241 = vst [vmem:[%s831_s24 + $0x10] sm:$0xff] %v233_v31  ;;  %v231_v37 = vadd.f32 0.5, %v223_v32  ;;  %v228_v38 = vmul.f32 0.5, %v532_v33 }
  0x54   : > { %v536_v39 = vpop.eup %535  ;;  %242 = vst [vmem:[%s831_s24 + $0x18] sm:$0xff] %v234_v34  ;;  %v229_v40 = vmul.f32 0.5, %v534_v36  ;;  %v235_v41 = vadd.f32 0.5, %v227_v35 }
  0x55   : > { %239 = vst [vmem:[%s831_s24] sm:$0xff] %v231_v37  ;;  %v230_v42 = vmul.f32 0.5, %v536_v39  ;;  %v236_v43 = vadd.f32 0.5, %v228_v38 }
  0x56   : > { %v237_v44 = vadd.f32 0.5, %v229_v40  ;;  %243 = vst [vmem:[%s831_s24 + $0x20] sm:$0xff] %v235_v41 }
  0x57   : > { %v238_v45 = vadd.f32 0.5, %v230_v42  ;;  %244 = vst [vmem:[%s831_s24 + $0x28] sm:$0xff] %v236_v43 }
  0x58   : > { %245 = vst [vmem:[%s831_s24 + $0x30] sm:$0xff] %v237_v44 }
  0x59   : > { %246 = vst [vmem:[%s831_s24 + $0x38] sm:$0xff] %v238_v45 }
  0xd2   : > { %260 = sbr.rel (%p426_p9) target bundleno = 217 (0xd9), region = 32 }
  0xd4   : > { %v251_v46 = vpop.xlane.xlu0 %250 }
  0xd8   : > { %v256_v47 = vpop.xlane.xlu0 %255 }
  0xd9 PF: > { %v264_v49 = vld [vmem:[%s197_s17] sm:$0xff]  ;;  %v265_v50 = vld [vmem:[%s197_s17 + $0x8] sm:$0xff]  ;;  %vm268_vm1 = vcmask 7168   ;;  %s429_s22 = sshll.u32 %s649_s12, 2  ;;  %s435_s26 = sshll.u32 %s653_s13, 4 }
  0xda   : > { %v266_v51 = vadd.f32 %v264_v49, %v251_v46  ;;  %v267_v52 = vadd.f32 %v265_v50, %v256_v47  ;;  %s293_s3 = sshll.u32 %s831_s24, 4  ;;  %s290_s23 = sadd.s32 %s435_s26, %s429_s22  ;;  %s849_s3 = int_to_ptr.vmem [resolvable:$true] %s293_s3 }
  0xdb   : > { %s431_s4 = sshll.u32 %s290_s23, 7  ;;  %s272_s7 = scalar_lea.sflag [#allocation4], %s819_s5 }
  0xdc   : > { %269 = vst.msk [vmem:[%s197_s17] sm:$0xff] %vm268_vm1, %v266_v51  ;;  %270 = vst.msk [vmem:[%s197_s17 + $0x8] sm:$0xff] %vm268_vm1, %v267_v52  ;;  %s854_s29 = scalar_lea.hbm %s909_s1, %s431_s4  ;;  %s567_s12 = scalar_lea.vmem %s849_s3, 1024 }
  0xdd   : > { %p568_p12 = scmp.ne.s32.totalorder %s849_s3, %s567_s12  ;;  %p918_p0 = scmp.ne.s32.totalorder %s914_s25, 0 }
  0xde   : > { %s672_s13 = smov [#allocation5]  }
  0xdf   : > { %p569_p11 = pnand %p568_p12, %p918_p0  ;;  %s571_s24 = sshll.u32 %s672_s13, 4  ;;  %s572_s24 = int_to_ptr.vmem [resolvable:$false] %s571_s24 }
  0xe0   : > { %s573_s18 = scalar_lea.vmem %s572_s24, 2048  ;;  %p574_p2 = scmp.lt.s32.totalorder %s849_s3, %s572_s24 }
  0xe1   : > { %p570_p13 = pneg %p569_p11  ;;  %p575_p4 = scmp.lt.s32.totalorder %s573_s18, %s567_s12 }
  0xe3   : > { %p576_p6 = por %p575_p4, %p574_p2 }
  0xe5   : > { %p577_p7 = pnand %p576_p6, %p570_p13 }
  0xe7   : > { %580 = shalt.err (!%p577_p7)
}
  0xe8   : > { %s581_s21 = scalar_lea.hbm %s854_s29, 1024  ;;  %s585_s22 = scalar_lea.hbm %s909_s1, 4096 }
  0xe9   : > { %p582_p10 = scmp.ne.s32.totalorder %s854_s29, %s581_s21  ;;  %p586_p5 = scmp.lt.u32.totalorder %s854_s29, %s909_s1 }
  0xea   : > { %p587_p8 = scmp.lt.u32.totalorder %s585_s22, %s581_s21  ;;  %p589_p12 = scmp.lt.u32.totalorder %s581_s21, %s854_s29 }
  0xeb   : > { %p583_p1 = pnand %p582_p10, %p918_p0 }
  0xec   : > { %p588_p9 = por %p587_p8, %p586_p5 }
  0xed   : > { %p584_p3 = pneg %p583_p1 }
  0xee   : > { %p590_p11 = por %p589_p12, %p588_p9 }
  0xf0   : > { %p591_p13 = pnand %p590_p11, %p584_p3 }
  0xf2   : > { %594 = shalt.err (!%p591_p13)
}
  0xf3   : > { %s673_s4 = smov 512   ;;  %s674_s6 = smov 1024  }
  0xf4   : > { %s675_s8 = smov 32  }
  0xf5   : > { %438 = dma.vmem_to_hbm [thread:$0]  (%p918_p0), %s849_s3, 1024, %s854_s29, %s272_s7, %s673_s4, %s674_s6, %s675_s8  }
  0xf6 PF: > { %p449_p2 = scmp.ge.s32.totalorder %s665_s16, 2  ;;  %s312_s12 = sand.u32 1, %s637_s9  }
  0xf7   : > { %p919_p4 = scmp.ne.s32.totalorder %s915_s28, 0  ;;  %s313_s13 = scalar_lea.sflag [#allocation4], %s312_s12 }
  0xf9   : > { %p445_p6 = pnand %p449_p2, %p919_p4 }
  0xfb   : > { %632 = dma.done.wait (!%p445_p6), %s313_s13, 1024  }
  0xfc   : > { %634 = vsyncadd (!%p445_p6), %s313_s13, 4294966272  ;;  %s19_s16 = sadd.s32 1, %s665_s16   ;;  %s920_s9 = smov %s641_s10 }
  0xfd   : > { %p16_p7 = scmp.ge.s32.totalorder %s19_s16, 6   ;;  %s921_s10 = smov %s645_s11 }
  0xfe   : > { %s922_s11 = smov %s769_s30  ;;  %s923_s12 = smov %s657_s14 }
  0xff   : > { %s924_s13 = smov %s661_s15  ;;  %s925_s14 = smov %s928_s19 }
 0x100   : > { %s926_s15 = smov %s932_s20  ;;  %18 = sbr.rel (!%p16_p7) target bundleno = 7 (0x7), region = 85 }
 0x107   :  { %326 = vsyncpa [#allocation3], 1 }
 0x108   :  { %328 = vsyncpa [#allocation3 + $0x1], 1 }
 0x109   :  { %329 = vsyncpa [#allocation4], 1 }
 0x10a   :  { %331 = vsyncpa [#allocation4 + $0x1], 1 }

</bundles_post_ra>
